<compile_context>
chip_gen: v5e
topology: v5e:2x2
jax: 0.10.0
libtpu: 0.0.40
codegen_flags: <defaults>
</compile_context>

<pallas_src>
import jax
import jax.numpy as jnp
from jax import lax
from jax.experimental import pallas as pl
from jax.experimental.pallas import tpu as pltpu

_PAD_NORM = 1e30  # +inf-ish poison for padded prototype columns (finite in f32)


def _round_up(a, b):
    return (a + b - 1) // b * b


def _proto_logp_kernel(q_ref, pt_ref, pnorm_ref, logp_ref):
    # Gram matrix on the MXU: bf16 inputs, f32 accumulation. RHS already (k, n).
    gram = lax.dot_general(q_ref[...], pt_ref[...], (((1,), (0,)), ((), ())),
                           preferred_element_type=jnp.float32)   # (tq, Cp)

    # Shifted logits: -dists + ||q||^2 = 2*Gram - ||p||^2.  log_softmax is
    # shift-invariant per row, so dropping ||q||^2 changes nothing downstream.
    # Padded classes carry pnorm = +1e30 -> logits ~ -1e30 -> exp() == 0.
    neg = 2.0 * gram - pnorm_ref[...]                             # (tq, Cp) f32

    row_max = jnp.max(neg, axis=1, keepdims=True)
    ex = jnp.exp(neg - row_max)
    denom = jnp.sum(ex, axis=1, keepdims=True)
    logp_ref[...] = (neg - (jnp.log(denom) + row_max)).astype(logp_ref.dtype)


def prototypical_loss(x, target, *, n_support, n_classes, logp_dtype=jnp.float32):
    """JAX/Pallas equivalent of PrototypicalLoss.forward.

    Returns (loss, acc, log_p, target_inds, prototypes, classes).
    Episode must be balanced: every class appears exactly
    (n_support + n_query) times in `target`.
    """
    n, d = x.shape
    assert n % n_classes == 0, "unbalanced episode"
    per_class = n // n_classes
    n_query = per_class - n_support
    assert n_query > 0, "n_support must be < samples per class"
    nq_total = n_classes * n_query

    # --- glue: static-shape replacement of torch.unique / nonzero indexing ---
    classes = jnp.unique(target, size=n_classes)                  # sorted, like torch.unique
    order = jnp.argsort(target, stable=True).reshape(n_classes, per_class)
    supp_idx = order[:, :n_support].reshape(-1)                   # class-major
    query_idx = order[:, n_support:].reshape(-1)                  # class-major

    # Prototypes = per-class mean of support embeddings (tiny, done in wrapper, f32).
    protos = x[supp_idx].astype(jnp.float32).reshape(
        n_classes, n_support, d).mean(axis=1)                     # (C, D) f32

    # --- padding / tiling geometry ---
    d_pad = _round_up(d, 128)
    c_pad = _round_up(n_classes, 128)
    tq = min(256, max(16, _round_up(-(-nq_total // 2), 16)))      # >=2 tiles when possible
    nq_pad = _round_up(nq_total, tq)
    num_tiles = nq_pad // tq

    # Fused gather + pad + cast: single bf16 materialization per operand.
    q_bf = jnp.zeros((nq_pad, d_pad), jnp.bfloat16).at[:nq_total, :d].set(
        x[query_idx].astype(jnp.bfloat16))
    protos_bf = protos.astype(jnp.bfloat16)
    pt_bf = jnp.zeros((d_pad, c_pad), jnp.bfloat16).at[:d, :n_classes].set(
        protos_bf.T)                                              # (Dp, Cp), canonical (k, n)
    # ||p||^2 from the bf16-rounded prototypes (matches Gram precision); padded
    # columns poisoned with +1e30 so the kernel needs no class-validity mask.
    p_norm_valid = jnp.sum(jnp.square(protos_bf.astype(jnp.float32)), axis=1)  # (C,)
    p_norm = jnp.full((1, c_pad), _PAD_NORM, jnp.float32).at[0, :n_classes].set(
        p_norm_valid)

    logp_bytes = jnp.dtype(logp_dtype).itemsize
    vmem_est = (2 * tq * d_pad * 2           # query tile, double-buffered bf16
                + 2 * d_pad * c_pad * 2      # resident prototypes (2x buffered)
                + 2 * 8 * c_pad * 4          # proto norms (sublane-padded)
                + 2 * tq * c_pad * logp_bytes)  # log_p tile, double-buffered
    vmem_limit = int(min(64 * 1024 * 1024, max(32 * 1024 * 1024, 2 * vmem_est)))

    cost = pl.CostEstimate(
        flops=2 * nq_pad * c_pad * d_pad + 6 * nq_pad * c_pad,
        transcendentals=nq_pad * c_pad + nq_pad,
        bytes_accessed=(q_bf.size * 2 + pt_bf.size * 2 + p_norm.size * 4
                        + nq_pad * c_pad * logp_bytes),
    )

    logp_full = pl.pallas_call(
        _proto_logp_kernel,
        grid=(num_tiles,),
        in_specs=[
            pl.BlockSpec((tq, d_pad), lambda i: (i, 0)),      # query tile (pipelined)
            pl.BlockSpec((d_pad, c_pad), lambda i: (0, 0)),   # prototypes^T (resident)
            pl.BlockSpec((1, c_pad), lambda i: (0, 0)),       # poisoned proto norms
        ],
        out_specs=pl.BlockSpec((tq, c_pad), lambda i: (i, 0)),  # lane-dense log_p tile
        out_shape=jax.ShapeDtypeStruct((nq_pad, c_pad), logp_dtype),
        compiler_params=pltpu.CompilerParams(
            dimension_semantics=("parallel",),
            vmem_limit_bytes=vmem_limit),
        cost_estimate=cost,
    )(q_bf, pt_bf, p_norm)

    # Wrapper epilogue on the (small) valid slice: NLL gather + argmax.
    log_p = logp_full[:nq_total, :n_classes].astype(jnp.float32)
    target_inds = jnp.repeat(jnp.arange(n_classes, dtype=jnp.int32), n_query)
    loss = -jnp.mean(log_p[jnp.arange(nq_total), target_inds])
    pred = jnp.argmax(log_p, axis=1).astype(jnp.int32)            # first-max tie-break, like torch
    acc = jnp.mean((pred == target_inds).astype(jnp.float32))
    return loss, acc, log_p, target_inds, protos, classes


# ----------------------------- references ----------------------------------
def _reference_f32(x, target, *, n_support, n_classes):
    """Pure-JAX f32 reference mirroring the PyTorch code."""
    n, _ = x.shape
    per_class = n // n_classes
    n_query = per_class - n_support
    order = jnp.argsort(target, stable=True).reshape(n_classes, per_class)
    supp = x[order[:, :n_support].reshape(-1)].reshape(n_classes, n_support, -1)
    protos = supp.mean(axis=1)
    qx = x[order[:, n_support:].reshape(-1)]
    dists = jnp.sum((qx[:, None, :] - protos[None, :, :]) ** 2, axis=2)
    log_p = jax.nn.log_softmax(-dists, axis=1)
    tind = jnp.repeat(jnp.arange(n_classes), n_query)
    loss = -jnp.mean(log_p[jnp.arange(log_p.shape[0]), tind])
    acc = jnp.mean((jnp.argmax(log_p, axis=1) == tind).astype(jnp.float32))
    return loss, acc, log_p, protos


def _reference_matched(x, target, *, n_support, n_classes):
    """Reference at the kernel's effective precision (bf16 inputs, f32 math)."""
    n, _ = x.shape
    per_class = n // n_classes
    n_query = per_class - n_support
    order = jnp.argsort(target, stable=True).reshape(n_classes, per_class)
    supp = x[order[:, :n_support].reshape(-1)].reshape(n_classes, n_support, -1)
    protos = supp.astype(jnp.float32).mean(axis=1)
    qx = x[order[:, n_support:].reshape(-1)].astype(jnp.float32)
    qb = qx.astype(jnp.bfloat16).astype(jnp.float32)
    pb = protos.astype(jnp.bfloat16).astype(jnp.float32)
    dists = jnp.sum((qb[:, None, :] - pb[None, :, :]) ** 2, axis=2)
    log_p = jax.nn.log_softmax(-dists, axis=1)
    tind = jnp.repeat(jnp.arange(n_classes), n_query)
    loss = -jnp.mean(log_p[jnp.arange(log_p.shape[0]), tind])
    acc = jnp.mean((jnp.argmax(log_p, axis=1) == tind).astype(jnp.float32))
    return loss, acc, log_p, protos


if __name__ == "__main__":
    key = jax.random.PRNGKey(0)
    k_perm, k_x = jax.random.split(key)

    n_classes, n_support, n_query, D = 4, 2, 3, 32
    per_class = n_support + n_query
    N = n_classes * per_class                                    # 20 samples

    class_labels = jnp.array([3, 7, 1, 5], dtype=jnp.int32)
    labels = jnp.repeat(class_labels, per_class)                 # balanced episode
    perm = jax.random.permutation(k_perm, N)
    target = labels[perm]
    x = jax.random.normal(k_x, (N, D), dtype=jnp.float32)

    loss, acc, log_p, target_inds, protos, classes = prototypical_loss(
        x, target, n_support=n_support, n_classes=n_classes)
    jax.block_until_ready((loss, acc, log_p, target_inds, protos, classes))

    # 1) Validate kernel math against a precision-matched reference.
    m_loss, m_acc, m_logp, m_protos = _reference_matched(
        x, target, n_support=n_support, n_classes=n_classes)
    assert jnp.allclose(log_p, m_logp, atol=2e-3, rtol=2e-3)
    assert jnp.allclose(loss, m_loss, atol=2e-3, rtol=2e-3)
    assert jnp.allclose(acc, m_acc, atol=1e-6)
    assert jnp.allclose(protos, m_protos, atol=1e-5, rtol=1e-5)

    # 2) Sanity-check semantic fidelity against the full f32 reference
    #    (loose tolerance: kernel feeds bf16 to the MXU with f32 accumulation).
    f_loss, f_acc, f_logp, f_protos = _reference_f32(
        x, target, n_support=n_support, n_classes=n_classes)
    assert jnp.allclose(loss, f_loss, atol=0.3, rtol=0.05)
    assert jnp.allclose(log_p, f_logp, atol=0.3, rtol=0.05)
    assert jnp.allclose(protos, f_protos, atol=1e-5, rtol=1e-5)

    # Shape / metadata checks mirroring the torch return signature.
    assert log_p.shape == (n_classes * n_query, n_classes)
    assert target_inds.shape == (n_classes * n_query,)
    assert classes.shape == (n_classes,)

    print("KERNEL_OK")
</pallas_src>

<mosaic_0001>
module attributes {stable_mosaic.version = 11 : i64} {
  func.func @_proto_logp_kernel(%arg0: i32, %arg1: memref<16x128xbf16, #tpu.memory_space<vmem>>, %arg2: memref<128x128xbf16, #tpu.memory_space<vmem>>, %arg3: memref<1x128xf32, #tpu.memory_space<vmem>>, %arg4: memref<16x128xf32, #tpu.memory_space<vmem>>) attributes {dimension_semantics = [#tpu.dimension_semantics<parallel>], iteration_bounds = array<i64: 1>, scalar_prefetch = 0 : i64, scratch_operands = 0 : i64, tpu.core_type = #tpu.core_type<tc>, window_params = [{transform_indices = @transform_0, window_bounds = array<i64: 16, 128>}, {pipeline_mode = #tpu.pipeline_mode<synchronous>, transform_indices = @transform_1, window_bounds = array<i64: 128, 128>}, {pipeline_mode = #tpu.pipeline_mode<synchronous>, transform_indices = @transform_2, window_bounds = array<i64: 1, 128>}, {transform_indices = @transform_3, window_bounds = array<i64: 16, 128>}]} {
    %c0 = arith.constant 0 : index
    %c0_0 = arith.constant 0 : index
    %0 = vector.load %arg1[%c0, %c0_0] : memref<16x128xbf16, #tpu.memory_space<vmem>>, vector<16x128xbf16>
    %c0_1 = arith.constant 0 : index
    %c0_2 = arith.constant 0 : index
    %1 = vector.load %arg2[%c0_1, %c0_2] : memref<128x128xbf16, #tpu.memory_space<vmem>>, vector<128x128xbf16>
    %cst = arith.constant dense<0.000000e+00> : vector<16x128xf32>
    %2 = tpu.matmul %0, %1, %cst {dimension_numbers = #tpu.dot_dimension_numbers<[1], [0], [0], [1], [0, 0, 1, 1], [], []>} : vector<16x128xbf16>, vector<128x128xbf16>, vector<16x128xf32> -> vector<16x128xf32>
    %cst_3 = arith.constant 2.000000e+00 : f32
    %3 = vector.broadcast %cst_3 : f32 to vector<16x128xf32>
    %4 = arith.mulf %3, %2 : vector<16x128xf32>
    %c0_4 = arith.constant 0 : index
    %c0_5 = arith.constant 0 : index
    %5 = vector.load %arg3[%c0_4, %c0_5] : memref<1x128xf32, #tpu.memory_space<vmem>>, vector<1x128xf32>
    %6 = vector.broadcast %5 : vector<1x128xf32> to vector<16x128xf32>
    %7 = arith.subf %4, %6 : vector<16x128xf32>
    %cst_6 = arith.constant dense<0xFF800000> : vector<16xf32>
    %8 = vector.multi_reduction <maximumf>, %7, %cst_6 [1] : vector<16x128xf32> to vector<16xf32>
    %9 = vector.shape_cast %8 : vector<16xf32> to vector<16x1xf32>
    %10 = vector.broadcast %9 : vector<16x1xf32> to vector<16x128xf32>
    %11 = arith.subf %7, %10 : vector<16x128xf32>
    %12 = math.exp %11 : vector<16x128xf32>
    %cst_7 = arith.constant dense<0.000000e+00> : vector<16xf32>
    %13 = vector.multi_reduction <add>, %12, %cst_7 [1] : vector<16x128xf32> to vector<16xf32>
    %14 = vector.shape_cast %13 : vector<16xf32> to vector<16x1xf32>
    %15 = math.log %14 : vector<16x1xf32>
    %16 = arith.addf %15, %9 : vector<16x1xf32>
    %17 = vector.broadcast %16 : vector<16x1xf32> to vector<16x128xf32>
    %18 = arith.subf %7, %17 : vector<16x128xf32>
    %c0_8 = arith.constant 0 : index
    %c0_9 = arith.constant 0 : index
    %19 = vector.load %arg4[%c0_8, %c0_9] : memref<16x128xf32, #tpu.memory_space<vmem>>, vector<16x128xf32>
    tpu.vector_store %arg4[%c0_8, %c0_9], %18 {strides = array<i32>} : memref<16x128xf32, #tpu.memory_space<vmem>>, vector<16x128xf32>,
    return
  }
  func.func @transform_0(%arg0: i32) -> (i32, i32) {
    %c0_i32 = arith.constant 0 : i32
    %c0_i32_0 = arith.constant 0 : i32
    return %arg0, %c0_i32 : i32, i32
  }
  func.func @transform_1(%arg0: i32) -> (i32, i32) {
    %c0_i32 = arith.constant 0 : i32
    %c0_i32_0 = arith.constant 0 : i32
    %c0_i32_1 = arith.constant 0 : i32
    return %c0_i32, %c0_i32_0 : i32, i32
  }
  func.func @transform_2(%arg0: i32) -> (i32, i32) {
    %c0_i32 = arith.constant 0 : i32
    %c0_i32_0 = arith.constant 0 : i32
    %c0_i32_1 = arith.constant 0 : i32
    return %c0_i32, %c0_i32_0 : i32, i32
  }
  func.func @transform_3(%arg0: i32) -> (i32, i32) {
    %c0_i32 = arith.constant 0 : i32
    %c0_i32_0 = arith.constant 0 : i32
    return %arg0, %c0_i32 : i32, i32
  }
}

</mosaic_0001>

<bundles_post_ra>
// kernel: tpu_custom_call.1
= control target key start
LH: loop header
LB: loop body
LE: loop exit
PB: predicated region body
PF: predicated region fallthrough
CT: control target
= control target key end

     0   :  { %8 = vsyncpa [#allocation3], 0  ;;  %s363_s0 = inlined_call_operand.hbm [shape: bf16[16,128], index: 0, kind: input, shape index: {}]   ;;  %s364_s1 = inlined_call_operand.hbm [shape: bf16[128,128], index: 1, kind: input, shape index: {}]   ;;  %s365_s2 = inlined_call_operand.vmem [shape: f32[1,128], index: 2, kind: input, shape index: {}]   ;;  %s366_s3 = inlined_call_operand.hbm [shape: f32[16,128], index: 3, kind: output, shape index: {}]  }
   0x1   :  { %9 = vsyncpa [#allocation6], 0 }
   0x2   :  { %10 = vsyncpa [#allocation4], 0  ;;  %s15_s14 = sshll.u32 %s363_s0, 4  ;;  %s324_s15 = smov [#allocation2]   ;;  %s16_s14 = int_to_ptr.hbm [resolvable:$true] %s15_s14 }
   0x3   :  { %s17_s16 = sshll.u32 %s324_s15, 4  ;;  %s28_s19 = sshll.u32 %s364_s1, 4  ;;  %s18_s16 = int_to_ptr.vmem [resolvable:$true] %s17_s16  ;;  %s29_s19 = int_to_ptr.hbm [resolvable:$true] %s28_s19 }
   0x4   :  { %s325_s20 = smov 64   ;;  %s326_s21 = smov 4  }
   0x5   :  { %23 = dma.hbm_to_vmem [thread:$0]  %s16_s14, 128, %s18_s16, [#allocation3], %s325_s20, %s325_s20, %s326_s21  }
   0x6   :  { %s327_s22 = smov [#allocation5]  }
   0x7   :  { %s30_s23 = sshll.u32 %s327_s22, 4  ;;  %s31_s23 = int_to_ptr.vmem [resolvable:$true] %s30_s23 }
   0x8   :  { %36 = dma.hbm_to_vmem [thread:$0]  %s29_s19, 1024, %s31_s23, [#allocation6], %s325_s20, %s325_s20, %s326_s21  }
   0x9   :  { %318 = dma.done.wait [#allocation3], 128  }
   0xa   :  { %319 = vsyncadd [#allocation3], 4294967168 }
   0xb   :  { %320 = dma.done.wait [#allocation6], 1024  }
   0xc   :  { %321 = vsyncadd [#allocation6], 4294966272  ;;  %v229_v0 = vld [vmem:[#allocation5 + $0x38] sm:$0xff]  ;;  %v228_v1 = vld [vmem:[#allocation5 + $0x30] sm:$0xff]  ;;  %s171_s27 = sshll.u32 %s366_s3, 4  ;;  %s329_s28 = smov 128   ;;  %s172_s27 = int_to_ptr.hbm [resolvable:$true] %s171_s27 }
   0xd   :  { %119 = vmatpush.bf16.msra.mxu0 %v229_v0  ;;  %v227_v2 = vld [vmem:[#allocation5 + $0x28] sm:$0xff]  ;;  %v226_v3 = vld [vmem:[#allocation5 + $0x20] sm:$0xff]  ;;  %v225_v4 = vld [vmem:[#allocation5 + $0x18] sm:$0xff]  ;;  %s330_s29 = smov 8  }
   0xe   :  { %v224_v5 = vld [vmem:[#allocation5 + $0x10] sm:$0xff]  ;;  %v223_v6 = vld [vmem:[#allocation5 + $0x8] sm:$0xff]  ;;  %v222_v7 = vld [vmem:[#allocation5] sm:$0xff] }
   0xf   :  { %v221_v8 = vld [vmem:[#allocation2] sm:$0xff] }
  0x10   :  { %v237_v9 = vld [vmem:[%s365_s2] ss:$0 sm:$0xff]  ;;  %s328_s2 = smov [#allocation7]  }
  0x11   :  { %120 = vmatpush.bf16.msra.mxu0 %v228_v1  ;;  %s169_s24 = sshll.u32 %s328_s2, 4  ;;  %s170_s24 = int_to_ptr.vmem [resolvable:$true] %s169_s24 }
  0x15   :  { %121 = vmatpush.bf16.msra.mxu0 %v227_v2 }
  0x19   :  { %122 = vmatpush.bf16.msra.mxu0 %v226_v3 }
  0x1d   :  { %123 = vmatpush.bf16.msra.mxu0 %v225_v4 }
  0x21   :  { %124 = vmatpush.bf16.msra.mxu0 %v224_v5 }
  0x25   :  { %125 = vmatpush.bf16.msra.mxu0 %v223_v6 }
  0x29   :  { %126 = vmatpush.bf16.msra.mxu0 %v222_v7 }
  0x2c   :  { %127 = vmatmul.bf16.vlgmr.msra.gmra.mxu0 %v221_v8 }
  0xa9   :  { %v128_v10 = vpop.f32.mrf.mxu0 }
  0xaa   :  { %v133_v11 = vmul.f32 2.0, %v128_v10 }
  0xac   :  { %v139_v12 = vsub.f32 %v133_v11, %v237_v9 }
  0xae   :  { %141 = vmax.xlane.f32.xlu0 %v139_v12 }
  0xb1   :  { %v130_v13 = vpop.f32.mrf.mxu0 }
  0xb2   :  { %v134_v14 = vmul.f32 2.0, %v130_v13 }
  0xb4   :  { %v140_v15 = vsub.f32 %v134_v14, %v237_v9 }
  0xb6   :  { %143 = vmax.xlane.f32.xlu0 %v140_v15 }
 0x121   :  { %v142_v16 = vpop.xlane.xlu0 %141 }
 0x122   :  { %v145_v17 = vsub.f32 %v139_v12, %v142_v16 }
 0x124   :  { %v147_v18 = vmul.f32 1.442695, %v145_v17 }
 0x126   :  { %238 = vpow2.f32 %v147_v18 }
 0x129   :  { %v144_v19 = vpop.xlane.xlu0 %143 }
 0x12a   :  { %v146_v20 = vsub.f32 %v140_v15, %v144_v19 }
 0x12c   :  { %v239_v21 = vpop.eup %238  ;;  %v149_v22 = vmul.f32 1.442695, %v146_v20 }
 0x12d   :  { %151 = vadd.xlane.f32.xlu1 %v239_v21 }
 0x12e   :  { %240 = vpow2.f32 %v149_v22 }
 0x134   :  { %v241_v23 = vpop.eup %240 }
 0x135   :  { %153 = vadd.xlane.f32.xlu1 %v241_v23 }
 0x1a0   :  { %v152_v24 = vpop.xlane.xlu1 %151 }
 0x1a1   :  { %242 = vlog2.f32 %v152_v24 }
 0x1a7   :  { %v243_v25 = vpop.eup %242 }
 0x1a8   :  { %v156_v26 = vmul.f32 0.6931472, %v243_v25  ;;  %v154_v27 = vpop.xlane.xlu1 %153 }
 0x1a9   :  { %244 = vlog2.f32 %v154_v27 }
 0x1aa   :  { %v159_v28 = vadd.f32 %v156_v26, %v142_v16 }
 0x1ac   :  { %v161_v29 = vsub.f32 %v139_v12, %v159_v28 }
 0x1ae   :  { %163 = vst [vmem:[#allocation7] sm:$0xff] %v161_v29 }
 0x1af   :  { %v245_v30 = vpop.eup %244 }
 0x1b0   :  { %v158_v31 = vmul.f32 0.6931472, %v245_v30 }
 0x1b2   :  { %v160_v32 = vadd.f32 %v158_v31, %v144_v19 }
 0x1b4   :  { %v162_v33 = vsub.f32 %v140_v15, %v160_v32 }
 0x1b6   :  { %164 = vst [vmem:[#allocation7 + $0x8] sm:$0xff] %v162_v33 }
 0x1b7   :  { %177 = dma.vmem_to_hbm [thread:$0]  %s170_s24, 256, %s172_s27, [#allocation4], %s329_s28, %s329_s28, %s330_s29  }
 0x1b8   :  { %322 = dma.done.wait [#allocation4], 256  }
 0x1b9   :  { %323 = vsyncadd [#allocation4], 4294967040 }
 0x1ba   :  { %182 = vsyncpa [#allocation3], 1 }
 0x1bb   :  { %183 = vsyncpa [#allocation6], 1 }
 0x1bc   :  { %184 = vsyncpa [#allocation4], 1 }

</bundles_post_ra>
